<compile_context>
chip_gen: v6e
topology: v6e:2x2x1
jax: 0.10.0
libtpu: 0.0.40
codegen_flags: <defaults>
</compile_context>

<pallas_src>
import functools

import jax
import jax.numpy as jnp
from jax.experimental import pallas as pl
from jax.experimental.pallas import tpu as pltpu


def _mlp_kernel(x_ref, w1_ref, b1_ref, w2_ref, b2_ref,
                w3_ref, b3_ref, w4_ref, b4_ref, o_ref):
    # Transposed layout: every activation is (features, batch_tile); batch on lanes.
    # Matmuls run on the MXU with f32 accumulation; bias add / ReLU stay f32.
    x = x_ref[...]
    h = jnp.dot(w1_ref[...], x, preferred_element_type=jnp.float32) + b1_ref[...]
    h = jnp.maximum(h, 0.0)
    h = jnp.dot(w2_ref[...], h.astype(w2_ref.dtype),
                preferred_element_type=jnp.float32) + b2_ref[...]
    h = jnp.maximum(h, 0.0)
    h = jnp.dot(w3_ref[...], h.astype(w3_ref.dtype),
                preferred_element_type=jnp.float32) + b3_ref[...]
    h = jnp.maximum(h, 0.0)
    o_ref[...] = (jnp.dot(w4_ref[...], h.astype(w4_ref.dtype),
                          preferred_element_type=jnp.float32)
                  + b4_ref[...]).astype(o_ref.dtype)


def _round_up(x, m):
    return ((x + m - 1) // m) * m


def _pick_batch_tile(B, *, x_bytes, in_size, hidden, out_size,
                     vmem_budget_bytes=16 << 20, cap=32768):
    """Batch tile on the lane axis: multiple of 128, sized from a VMEM budget
    (conservative for v7x's 64 MiB VMEM / 32 MiB default scoped limit), capped,
    and split so there are >= 2 grid steps whenever the batch allows (v7x has
    two TensorCores sharded over the 'parallel' grid axis)."""
    # Bytes per batch column while a tile is in flight: double-buffered x / out
    # tiles plus a generous allowance for live f32 hidden activations.
    per_col = 2 * (in_size * x_bytes + out_size * 4) + 8 * hidden * 4
    tb_budget = max(128, min(cap, (vmem_budget_bytes // per_col) // 128 * 128))

    b_padded = _round_up(B, 128)
    if b_padded <= 128:
        return 128
    # Keep at least two grid steps so both v7x TensorCores get work.
    tb_budget = min(tb_budget, max(128, (b_padded // 2) // 128 * 128))
    n_steps = -(-b_padded // tb_budget)              # cdiv
    return _round_up(-(-b_padded // n_steps), 128)   # even split, minimal padding


@functools.partial(jax.jit, static_argnames=("compute_dtype", "batch_tile"))
def linear_qnet_forward(x, params, *, compute_dtype=jnp.bfloat16, batch_tile=None):
    """Fused 4-layer MLP forward pass.

    x: (B, input_size) float32
    params: PyTorch-layout weights w1..w4 of shape (out_features, in_features)
            and biases b1..b4 of shape (out_features, 1), float32.
    """
    w1, b1, w2, b2, w3, b3, w4, b4 = (params[k] for k in
                                      ("w1", "b1", "w2", "b2", "w3", "b3", "w4", "b4"))
    B, in_size = x.shape
    hidden = w1.shape[0]
    out_size = w4.shape[0]

    cd = jnp.dtype(compute_dtype)
    if batch_tile is None:
        tb = _pick_batch_tile(B, x_bytes=cd.itemsize, in_size=in_size,
                              hidden=hidden, out_size=out_size)
    else:
        tb = _round_up(max(int(batch_tile), 128), 128)

    b_padded = _round_up(B, tb)

    # Transpose once in the wrapper so batch sits on lanes; zero-pad batch to a
    # multiple of the tile (padded columns are computed then discarded).
    xt = jnp.pad(x.T, ((0, 0), (0, b_padded - B))).astype(cd)       # (in, Bp)
    cast = lambda w: w.astype(cd)

    # Weights/biases: whole-array residents in VMEM (loaded once, no per-step DMA).
    resident = pl.BlockSpec(memory_space=pltpu.MemorySpace.VMEM)

    out_t = pl.pallas_call(
        _mlp_kernel,
        out_shape=jax.ShapeDtypeStruct((out_size, b_padded), jnp.float32),
        grid=(b_padded // tb,),
        in_specs=[
            pl.BlockSpec((in_size, tb), lambda i: (0, i)),  # x: pipelined over batch
            resident, resident,   # layer 1 (w1, b1)
            resident, resident,   # layer 2 (w2, b2)
            resident, resident,   # layer 3 (w3, b3)
            resident, resident,   # layer 4 (w4, b4)
        ],
        out_specs=pl.BlockSpec((out_size, tb), lambda i: (0, i)),    # lane-dense store
        compiler_params=pltpu.CompilerParams(
            # Batch grid steps are independent -> megacore-shardable (2 TCs on v7x).
            dimension_semantics=("parallel",)),
    )(xt, cast(w1), b1, cast(w2), b2, cast(w3), b3, cast(w4), b4)

    return out_t[:, :B].T                                            # (B, out_size)


def init_params(key, input_size, hidden_size, output_size):
    """nn.Linear-style init, PyTorch layout: w (out, in), b (out, 1), f32."""
    def layer(k, fan_in, fan_out):
        kw, kb = jax.random.split(k)
        bound = 1.0 / jnp.sqrt(fan_in)
        w = jax.random.uniform(kw, (fan_out, fan_in), jnp.float32, -bound, bound)
        b = jax.random.uniform(kb, (fan_out, 1), jnp.float32, -bound, bound)
        return w, b

    k1, k2, k3, k4 = jax.random.split(key, 4)
    w1, b1 = layer(k1, input_size, hidden_size)
    w2, b2 = layer(k2, hidden_size, hidden_size)
    w3, b3 = layer(k3, hidden_size, hidden_size)
    w4, b4 = layer(k4, hidden_size, output_size)
    return dict(w1=w1, b1=b1, w2=w2, b2=b2, w3=w3, b3=b3, w4=w4, b4=b4)


def _reference_forward(x, p):
    h = jnp.maximum(x @ p["w1"].T + p["b1"].T, 0.0)
    h = jnp.maximum(h @ p["w2"].T + p["b2"].T, 0.0)
    h = jnp.maximum(h @ p["w3"].T + p["b3"].T, 0.0)
    return h @ p["w4"].T + p["b4"].T


if __name__ == "__main__":
    # Shapes consistent with the module spec: input=16, hidden=32, output=4.
    input_size, hidden_size, output_size = 16, 32, 4
    batch = 8

    key = jax.random.PRNGKey(0)
    k_params, k_x = jax.random.split(key)
    params = init_params(k_params, input_size, hidden_size, output_size)
    x = jax.random.normal(k_x, (batch, input_size), jnp.float32)
    y_ref = _reference_forward(x, params)

    # f32 compute path: bit-tight check.
    y = jax.block_until_ready(
        linear_qnet_forward(x, params, compute_dtype=jnp.float32))
    assert y.shape == (batch, output_size)
    assert jnp.allclose(y, y_ref, atol=1e-5, rtol=1e-5), "f32 mismatch vs reference"

    # Default bf16 compute path (f32 accumulation): looser tolerance.
    y_bf16 = jax.block_until_ready(linear_qnet_forward(x, params))
    assert jnp.allclose(y_bf16, y_ref, atol=5e-2, rtol=5e-2), "bf16 mismatch vs reference"

    # Multi-step + padding path: batch=200 pads to 256 -> 2 parallel 128-wide tiles.
    x2 = jax.random.normal(jax.random.PRNGKey(1), (200, input_size), jnp.float32)
    y2 = jax.block_until_ready(linear_qnet_forward(x2, params, batch_tile=128))
    assert y2.shape == (200, output_size)
    assert jnp.allclose(y2, _reference_forward(x2, params), atol=5e-2, rtol=5e-2)

    print("KERNEL_OK")
</pallas_src>

<mosaic_0001>
module attributes {stable_mosaic.version = 11 : i64} {
  func.func @_mlp_kernel(%arg0: i32, %arg1: memref<16x128xf32, #tpu.memory_space<vmem>>, %arg2: memref<32x16xf32, #tpu.memory_space<vmem>>, %arg3: memref<32x1xf32, #tpu.memory_space<vmem>>, %arg4: memref<32x32xf32, #tpu.memory_space<vmem>>, %arg5: memref<32x1xf32, #tpu.memory_space<vmem>>, %arg6: memref<32x32xf32, #tpu.memory_space<vmem>>, %arg7: memref<32x1xf32, #tpu.memory_space<vmem>>, %arg8: memref<4x32xf32, #tpu.memory_space<vmem>>, %arg9: memref<4x1xf32, #tpu.memory_space<vmem>>, %arg10: memref<4x128xf32, #tpu.memory_space<vmem>>) attributes {dimension_semantics = [#tpu.dimension_semantics<parallel>], iteration_bounds = array<i64: 1>, scalar_prefetch = 0 : i64, scratch_operands = 0 : i64, tpu.core_type = #tpu.core_type<tc>, window_params = [{transform_indices = @transform_0, window_bounds = array<i64: 16, 128>}, {pipeline_mode = #tpu.pipeline_mode<synchronous>, transform_indices = @transform_1, window_bounds = array<i64: 32, 16>}, {pipeline_mode = #tpu.pipeline_mode<synchronous>, transform_indices = @transform_2, window_bounds = array<i64: 32, 1>}, {pipeline_mode = #tpu.pipeline_mode<synchronous>, transform_indices = @transform_3, window_bounds = array<i64: 32, 32>}, {pipeline_mode = #tpu.pipeline_mode<synchronous>, transform_indices = @transform_4, window_bounds = array<i64: 32, 1>}, {pipeline_mode = #tpu.pipeline_mode<synchronous>, transform_indices = @transform_5, window_bounds = array<i64: 32, 32>}, {pipeline_mode = #tpu.pipeline_mode<synchronous>, transform_indices = @transform_6, window_bounds = array<i64: 32, 1>}, {pipeline_mode = #tpu.pipeline_mode<synchronous>, transform_indices = @transform_7, window_bounds = array<i64: 4, 32>}, {pipeline_mode = #tpu.pipeline_mode<synchronous>, transform_indices = @transform_8, window_bounds = array<i64: 4, 1>}, {transform_indices = @transform_9, window_bounds = array<i64: 4, 128>}]} {
    %c0 = arith.constant 0 : index
    %c0_0 = arith.constant 0 : index
    %0 = vector.load %arg1[%c0, %c0_0] : memref<16x128xf32, #tpu.memory_space<vmem>>, vector<16x128xf32>
    %c0_1 = arith.constant 0 : index
    %c0_2 = arith.constant 0 : index
    %1 = vector.load %arg2[%c0_1, %c0_2] : memref<32x16xf32, #tpu.memory_space<vmem>>, vector<32x16xf32>
    %cst = arith.constant dense<0.000000e+00> : vector<32x128xf32>
    %2 = tpu.matmul %1, %0, %cst {dimension_numbers = #tpu.dot_dimension_numbers<[1], [0], [0], [1], [0, 0, 1, 1], [], []>} : vector<32x16xf32>, vector<16x128xf32>, vector<32x128xf32> -> vector<32x128xf32>
    %c0_3 = arith.constant 0 : index
    %c0_4 = arith.constant 0 : index
    %3 = vector.load %arg3[%c0_3, %c0_4] : memref<32x1xf32, #tpu.memory_space<vmem>>, vector<32x1xf32>
    %4 = vector.broadcast %3 : vector<32x1xf32> to vector<32x128xf32>
    %5 = arith.addf %2, %4 : vector<32x128xf32>
    %cst_5 = arith.constant 0.000000e+00 : f32
    %6 = vector.broadcast %cst_5 : f32 to vector<32x128xf32>
    %7 = arith.maximumf %5, %6 : vector<32x128xf32>
    %c0_6 = arith.constant 0 : index
    %c0_7 = arith.constant 0 : index
    %8 = vector.load %arg4[%c0_6, %c0_7] : memref<32x32xf32, #tpu.memory_space<vmem>>, vector<32x32xf32>
    %cst_8 = arith.constant dense<0.000000e+00> : vector<32x128xf32>
    %9 = tpu.matmul %8, %7, %cst_8 {dimension_numbers = #tpu.dot_dimension_numbers<[1], [0], [0], [1], [0, 0, 1, 1], [], []>} : vector<32x32xf32>, vector<32x128xf32>, vector<32x128xf32> -> vector<32x128xf32>
    %c0_9 = arith.constant 0 : index
    %c0_10 = arith.constant 0 : index
    %10 = vector.load %arg5[%c0_9, %c0_10] : memref<32x1xf32, #tpu.memory_space<vmem>>, vector<32x1xf32>
    %11 = vector.broadcast %10 : vector<32x1xf32> to vector<32x128xf32>
    %12 = arith.addf %9, %11 : vector<32x128xf32>
    %cst_11 = arith.constant 0.000000e+00 : f32
    %13 = vector.broadcast %cst_11 : f32 to vector<32x128xf32>
    %14 = arith.maximumf %12, %13 : vector<32x128xf32>
    %c0_12 = arith.constant 0 : index
    %c0_13 = arith.constant 0 : index
    %15 = vector.load %arg6[%c0_12, %c0_13] : memref<32x32xf32, #tpu.memory_space<vmem>>, vector<32x32xf32>
    %cst_14 = arith.constant dense<0.000000e+00> : vector<32x128xf32>
    %16 = tpu.matmul %15, %14, %cst_14 {dimension_numbers = #tpu.dot_dimension_numbers<[1], [0], [0], [1], [0, 0, 1, 1], [], []>} : vector<32x32xf32>, vector<32x128xf32>, vector<32x128xf32> -> vector<32x128xf32>
    %c0_15 = arith.constant 0 : index
    %c0_16 = arith.constant 0 : index
    %17 = vector.load %arg7[%c0_15, %c0_16] : memref<32x1xf32, #tpu.memory_space<vmem>>, vector<32x1xf32>
    %18 = vector.broadcast %17 : vector<32x1xf32> to vector<32x128xf32>
    %19 = arith.addf %16, %18 : vector<32x128xf32>
    %cst_17 = arith.constant 0.000000e+00 : f32
    %20 = vector.broadcast %cst_17 : f32 to vector<32x128xf32>
    %21 = arith.maximumf %19, %20 : vector<32x128xf32>
    %c0_18 = arith.constant 0 : index
    %c0_19 = arith.constant 0 : index
    %22 = vector.load %arg8[%c0_18, %c0_19] : memref<4x32xf32, #tpu.memory_space<vmem>>, vector<4x32xf32>
    %cst_20 = arith.constant dense<0.000000e+00> : vector<4x128xf32>
    %23 = tpu.matmul %22, %21, %cst_20 {dimension_numbers = #tpu.dot_dimension_numbers<[1], [0], [0], [1], [0, 0, 1, 1], [], []>} : vector<4x32xf32>, vector<32x128xf32>, vector<4x128xf32> -> vector<4x128xf32>
    %c0_21 = arith.constant 0 : index
    %c0_22 = arith.constant 0 : index
    %24 = vector.load %arg9[%c0_21, %c0_22] : memref<4x1xf32, #tpu.memory_space<vmem>>, vector<4x1xf32>
    %25 = vector.broadcast %24 : vector<4x1xf32> to vector<4x128xf32>
    %26 = arith.addf %23, %25 : vector<4x128xf32>
    %c0_23 = arith.constant 0 : index
    %c0_24 = arith.constant 0 : index
    %27 = vector.load %arg10[%c0_23, %c0_24] : memref<4x128xf32, #tpu.memory_space<vmem>>, vector<4x128xf32>
    tpu.vector_store %arg10[%c0_23, %c0_24], %26 {strides = array<i32>} : memref<4x128xf32, #tpu.memory_space<vmem>>, vector<4x128xf32>,
    return
  }
  func.func @transform_0(%arg0: i32) -> (i32, i32) {
    %c0_i32 = arith.constant 0 : i32
    %c0_i32_0 = arith.constant 0 : i32
    return %c0_i32, %arg0 : i32, i32
  }
  func.func @transform_1(%arg0: i32) -> (i32, i32) {
    %c0_i32 = arith.constant 0 : i32
    %c0_i32_0 = arith.constant 0 : i32
    %c0_i32_1 = arith.constant 0 : i32
    return %c0_i32, %c0_i32_0 : i32, i32
  }
  func.func @transform_2(%arg0: i32) -> (i32, i32) {
    %c0_i32 = arith.constant 0 : i32
    %c0_i32_0 = arith.constant 0 : i32
    %c0_i32_1 = arith.constant 0 : i32
    return %c0_i32, %c0_i32_0 : i32, i32
  }
  func.func @transform_3(%arg0: i32) -> (i32, i32) {
    %c0_i32 = arith.constant 0 : i32
    %c0_i32_0 = arith.constant 0 : i32
    %c0_i32_1 = arith.constant 0 : i32
    return %c0_i32, %c0_i32_0 : i32, i32
  }
  func.func @transform_4(%arg0: i32) -> (i32, i32) {
    %c0_i32 = arith.constant 0 : i32
    %c0_i32_0 = arith.constant 0 : i32
    %c0_i32_1 = arith.constant 0 : i32
    return %c0_i32, %c0_i32_0 : i32, i32
  }
  func.func @transform_5(%arg0: i32) -> (i32, i32) {
    %c0_i32 = arith.constant 0 : i32
    %c0_i32_0 = arith.constant 0 : i32
    %c0_i32_1 = arith.constant 0 : i32
    return %c0_i32, %c0_i32_0 : i32, i32
  }
  func.func @transform_6(%arg0: i32) -> (i32, i32) {
    %c0_i32 = arith.constant 0 : i32
    %c0_i32_0 = arith.constant 0 : i32
    %c0_i32_1 = arith.constant 0 : i32
    return %c0_i32, %c0_i32_0 : i32, i32
  }
  func.func @transform_7(%arg0: i32) -> (i32, i32) {
    %c0_i32 = arith.constant 0 : i32
    %c0_i32_0 = arith.constant 0 : i32
    %c0_i32_1 = arith.constant 0 : i32
    return %c0_i32, %c0_i32_0 : i32, i32
  }
  func.func @transform_8(%arg0: i32) -> (i32, i32) {
    %c0_i32 = arith.constant 0 : i32
    %c0_i32_0 = arith.constant 0 : i32
    %c0_i32_1 = arith.constant 0 : i32
    return %c0_i32, %c0_i32_0 : i32, i32
  }
  func.func @transform_9(%arg0: i32) -> (i32, i32) {
    %c0_i32 = arith.constant 0 : i32
    %c0_i32_0 = arith.constant 0 : i32
    return %c0_i32, %arg0 : i32, i32
  }
}

</mosaic_0001>

<bundles_post_ra>
// kernel: linear_qnet_forward.1
= control target key start
LH: loop header
LB: loop body
LE: loop exit
PB: predicated region body
PF: predicated region fallthrough
CT: control target
= control target key end

     0   :  { %vm62_vm0 = vcmask 130048   ;;  %v602_v3 = vmov 0   ;;  %vm192_vm1 = vcmask 261120   ;;  %v603_v60 = vmov 0.0   ;;  %s755_s0 = inlined_call_operand.vmem [shape: f32[16,128], index: 0, kind: input, shape index: {}]   ;;  %s756_s1 = inlined_call_operand.vmem [shape: f32[32,16], index: 1, kind: input, shape index: {}]   ;;  %s757_s2 = inlined_call_operand.vmem [shape: f32[32,1], index: 2, kind: input, shape index: {}]   ;;  %s758_s4 = inlined_call_operand.vmem [shape: f32[32,1], index: 4, kind: input, shape index: {}]   ;;  %s759_s6 = inlined_call_operand.vmem [shape: f32[32,1], index: 6, kind: input, shape index: {}]   ;;  %s760_s8 = inlined_call_operand.vmem [shape: f32[4,1], index: 8, kind: input, shape index: {}]   ;;  %s761_s3 = inlined_call_operand.vmem [shape: f32[32,32], index: 3, kind: input, shape index: {}]   ;;  %s762_s5 = inlined_call_operand.vmem [shape: f32[32,32], index: 5, kind: input, shape index: {}]   ;;  %s763_s7 = inlined_call_operand.vmem [shape: f32[4,32], index: 7, kind: input, shape index: {}]   ;;  %s764_s9 = inlined_call_operand.vmem [shape: f32[4,128], index: 9, kind: output, shape index: {}]  }
   0x1   :  { %v33_v0 = vld [vmem:[%s755_s0 + $0x8] sm:$0xff]  ;;  %v32_v1 = vld [vmem:[%s755_s0] sm:$0xff]  ;;  %600 = vset.pattern.permute.xlu0 %v602_v3  ;;  %601 = vset.pattern.permute.xlu1 %v602_v3  ;;  %v41_v5 = vld [vmem:[%s757_s2 + $0x18] sm:$0xff]  ;;  %vm604_vm2 = vmmov 0  }
   0x2   :  { %v34_v2 = vld [vmem:[%s756_s1] sm:$0xff]  ;;  %548 = vmatprep.subr.mxu0 %v33_v0  ;;  %v35_v4 = vld [vmem:[%s756_s1 + $0x8] sm:$0xff]  ;;  %v36_v6 = vld [vmem:[%s756_s1 + $0x10] sm:$0xff]  ;;  %59 = vperm.xlu0 %600, %v41_v5  }
   0x3   :  { %552 = vmatprep.mubr.msk.f32.mxu0 %vm62_vm0, %v34_v2  ;;  %549 = vmatpush3.msra.mxu0 %v33_v0  ;;  %v39_v7 = vld [vmem:[%s757_s2 + $0x8] sm:$0xff]  ;;  %v40_v8 = vld [vmem:[%s757_s2 + $0x10] sm:$0xff]  ;;  %v38_v9 = vld [vmem:[%s757_s2] sm:$0xff] }
   0x4   :  { %550 = vmatprep.subr.mxu0 %v32_v1  ;;  %49 = vperm.xlu1 %601, %v39_v7   ;;  %v37_v10 = vld [vmem:[%s756_s1 + $0x18] sm:$0xff]  ;;  %v170_v12 = vld [vmem:[%s758_s4 + $0x10] sm:$0xff]  ;;  %v169_v13 = vld [vmem:[%s758_s4 + $0x8] sm:$0xff] }
   0x5   :  { %551 = vmatpush3.msra.mxu0 %v32_v1  ;;  %v171_v11 = vld [vmem:[%s758_s4 + $0x18] sm:$0xff]  ;;  %v168_v14 = vld [vmem:[%s758_s4] sm:$0xff]  ;;  %v300_v16 = vld [vmem:[%s759_s6 + $0x10] sm:$0xff] }
   0x6   :  { %553 = vmatmul.mubr.msk.f32.vlgmr.msra.gmra.mxu0 %vm62_vm0, %v35_v4  ;;  %54 = vperm.xlu0 %600, %v40_v8   ;;  %v301_v15 = vld [vmem:[%s759_s6 + $0x18] sm:$0xff]  ;;  %v299_v17 = vld [vmem:[%s759_s6 + $0x8] sm:$0xff]  ;;  %v298_v18 = vld [vmem:[%s759_s6] sm:$0xff] }
   0x7   :  { %555 = vmatprep.mubr.msk.f32.mxu0 %vm62_vm0, %v36_v6  ;;  %v424_v19 = vld [vmem:[%s760_s8] sm:$0xf]  ;;  %v165_v37 = vld [vmem:[%s761_s3 + $0x8] sm:$0xff]  ;;  %v166_v38 = vld [vmem:[%s761_s3 + $0x10] sm:$0xff] }
   0x8   :  { %44 = vperm.xlu1 %601, %v38_v9   ;;  %v164_v20 = vld [vmem:[%s761_s3] sm:$0xff]  ;;  %v167_v39 = vld [vmem:[%s761_s3 + $0x18] sm:$0xff]  ;;  %v295_v57 = vld [vmem:[%s762_s5 + $0x8] sm:$0xff] }
   0x9   :  { %566 = vmatprep.mubr.msk.f32.mxu1 %vm192_vm1, %v164_v20  ;;  %v294_v40 = vld [vmem:[%s762_s5] sm:$0xff]  ;;  %v296_v58 = vld [vmem:[%s762_s5 + $0x10] sm:$0xff]  ;;  %v297_v59 = vld [vmem:[%s762_s5 + $0x18] sm:$0xff] }
   0xa   :  { %556 = vmatmul.mubr.msk.f32.gmra.mxu0 %vm62_vm0, %v37_v10  ;;  %189 = vperm.xlu0 %600, %v171_v11  }
   0xb   :  { %580 = vmatprep.mubr.msk.f32.mxu0 %vm192_vm1, %v294_v40 }
   0xc   :  { %184 = vperm.xlu1 %601, %v170_v12  }
   0xe   :  { %179 = vperm.xlu0 %600, %v169_v13   ;;  %v423_v13 = vld [vmem:[%s763_s7] sm:$0xf] }
  0x10   :  { %174 = vperm.xlu1 %601, %v168_v14  }
  0x12   :  { %319 = vperm.xlu0 %600, %v301_v15  }
  0x14   :  { %314 = vperm.xlu1 %601, %v300_v16  }
  0x16   :  { %309 = vperm.xlu0 %600, %v299_v17  }
  0x18   :  { %304 = vperm.xlu1 %601, %v298_v18  }
  0x1a   :  { %427 = vperm.xlu0 %600, %v424_v19  }
  0x7d   :  { %v60_v21 = vpop.permute.xlu0 %59 }
  0x7f   :  { %v50_v23 = vpop.permute.xlu1 %49 }
  0x81   :  { %v55_v27 = vpop.permute.xlu0 %54 }
  0x83   :  { %v45_v32 = vpop.permute.xlu1 %44 }
  0x85   :  { %v190_v41 = vpop.permute.xlu0 %189 }
  0x87   :  { %v185_v43 = vpop.permute.xlu1 %184 }
  0x89   :  { %v180_v47 = vpop.permute.xlu0 %179 }
  0x8b   :  { %v175_v52 = vpop.permute.xlu1 %174 }
  0x8d   :  { %v320_v61 = vpop.permute.xlu0 %319 }
  0x8f   :  { %v315_v63 = vpop.permute.xlu1 %314 }
  0x91   :  { %v310_v3 = vpop.permute.xlu0 %309 }
  0x93   :  { %v305_v8 = vpop.permute.xlu1 %304 }
  0x95   :  { %v428_v14 = vpop.permute.xlu0 %427 }
  0xc6   :  { %v554_v22 = vpop.f32.mrf.mxu0 }
  0xc7   :  { %v147_v29 = vadd.f32 %v554_v22, %v50_v23 }
  0xc8   :  { %v141_v24 = vpop.f32.mrf.mxu0 }
  0xc9   :  { %v142_v33 = vadd.f32 %v141_v24, %v45_v32  ;;  %v161_v35 = vmax.f32 %v147_v29, 0.0 }
  0xca   :  { %v557_v25 = vpop.f32.mrf.mxu0 }
  0xcb   :  { %v157_v26 = vadd.f32 %v557_v25, %v60_v21  ;;  %v160_v36 = vmax.f32 %v142_v33, 0.0 }
  0xcc   :  { %v151_v28 = vpop.f32.mrf.mxu0 }
  0xcd   :  { %v163_v30 = vmax.f32 %v157_v26, 0.0  ;;  %v152_v31 = vadd.f32 %v151_v28, %v55_v27 }
  0xcf   :  { %v162_v34 = vmax.f32 %v152_v31, 0.0  ;;  %558 = vmatprep.subr.mxu1 %v163_v30 }
  0xd0   :  { %559 = vmatpush3.msra.mxu1 %v163_v30 }
  0xd1   :  { %560 = vmatprep.subr.mxu1 %v162_v34 }
  0xd2   :  { %561 = vmatpush3.msra.mxu1 %v162_v34 }
  0xd3   :  { %562 = vmatprep.subr.mxu1 %v161_v35 }
  0xd4   :  { %563 = vmatpush3.msra.mxu1 %v161_v35 }
  0xd5   :  { %564 = vmatprep.subr.mxu1 %v160_v36 }
  0xd6   :  { %565 = vmatpush3.msra.mxu1 %v160_v36 }
  0xd7   :  { %567 = vmatmul.mubr.msk.f32.vlgmr.msra.gmra.mxu1 %vm192_vm1, %v165_v37  ;;  %586 = vmatprep.subr.mxu1 %v603_v60 }
  0xd8   :  { %569 = vmatprep.mubr.msk.f32.mxu1 %vm192_vm1, %v166_v38 }
  0xdb   :  { %570 = vmatmul.mubr.msk.f32.gmra.mxu1 %vm192_vm1, %v167_v39 }
  0xdc   :  { %594 = vmatprep.mubr.msk.f32.mxu1 %vm604_vm2, %v603_v60 }
 0x197   :  { %v568_v42 = vpop.f32.mrf.mxu1 }
 0x198   :  { %v277_v49 = vadd.f32 %v568_v42, %v180_v47 }
 0x199   :  { %v271_v44 = vpop.f32.mrf.mxu1 }
 0x19a   :  { %v272_v53 = vadd.f32 %v271_v44, %v175_v52  ;;  %v291_v55 = vmax.f32 %v277_v49, 0.0 }
 0x19b   :  { %v571_v45 = vpop.f32.mrf.mxu1 }
 0x19c   :  { %v287_v46 = vadd.f32 %v571_v45, %v190_v41  ;;  %v290_v56 = vmax.f32 %v272_v53, 0.0 }
 0x19d   :  { %v281_v48 = vpop.f32.mrf.mxu1 }
 0x19e   :  { %v293_v50 = vmax.f32 %v287_v46, 0.0  ;;  %v282_v51 = vadd.f32 %v281_v48, %v185_v43 }
 0x1a0   :  { %v292_v54 = vmax.f32 %v282_v51, 0.0  ;;  %572 = vmatprep.subr.mxu0 %v293_v50 }
 0x1a1   :  { %573 = vmatpush3.msra.mxu0 %v293_v50 }
 0x1a2   :  { %574 = vmatprep.subr.mxu0 %v292_v54 }
 0x1a3   :  { %575 = vmatpush3.msra.mxu0 %v292_v54 }
 0x1a4   :  { %576 = vmatprep.subr.mxu0 %v291_v55 }
 0x1a5   :  { %577 = vmatpush3.msra.mxu0 %v291_v55 }
 0x1a6   :  { %578 = vmatprep.subr.mxu0 %v290_v56 }
 0x1a7   :  { %579 = vmatpush3.msra.mxu0 %v290_v56 }
 0x1a8   :  { %581 = vmatmul.mubr.msk.f32.vlgmr.msra.gmra.mxu0 %vm192_vm1, %v295_v57 }
 0x1a9   :  { %583 = vmatprep.mubr.msk.f32.mxu0 %vm192_vm1, %v296_v58 }
 0x1ac   :  { %584 = vmatmul.mubr.msk.f32.gmra.mxu0 %vm192_vm1, %v297_v59 }
 0x268   :  { %v582_v62 = vpop.f32.mrf.mxu0 }
 0x269   :  { %v406_v5 = vadd.f32 %v582_v62, %v310_v3 }
 0x26a   :  { %v400_v0 = vpop.f32.mrf.mxu0 }
 0x26b   :  { %v401_v9 = vadd.f32 %v400_v0, %v305_v8  ;;  %v420_v11 = vmax.f32 %v406_v5, 0.0 }
 0x26c   :  { %v585_v1 = vpop.f32.mrf.mxu0 }
 0x26d   :  { %v416_v2 = vadd.f32 %v585_v1, %v320_v61  ;;  %v419_v12 = vmax.f32 %v401_v9, 0.0 }
 0x26e   :  { %v410_v4 = vpop.f32.mrf.mxu0 }
 0x26f   :  { %v422_v6 = vmax.f32 %v416_v2, 0.0  ;;  %v411_v7 = vadd.f32 %v410_v4, %v315_v63 }
 0x271   :  { %v421_v10 = vmax.f32 %v411_v7, 0.0  ;;  %587 = vmatpush3.msra.mxu1 %v422_v6 }
 0x272   :  { %588 = vmatprep.subr.mxu1 %v603_v60 }
 0x273   :  { %589 = vmatpush3.msra.mxu1 %v421_v10 }
 0x274   :  { %590 = vmatprep.subr.mxu1 %v603_v60 }
 0x275   :  { %591 = vmatpush3.msra.mxu1 %v420_v11 }
 0x276   :  { %592 = vmatprep.subr.mxu1 %v603_v60 }
 0x277   :  { %593 = vmatpush3.msra.mxu1 %v419_v12 }
 0x278   :  { %595 = vmatmul.mubr.msk.f32.vlgmr.msra.gmra.mxu1 %vm192_vm1, %v423_v13 }
 0x338   :  { %v499_v15 = vpop.f32.mrf.mxu1 }
 0x339   :  { %v500_v16 = vadd.f32 %v499_v15, %v428_v14 }
 0x33a   :  { %v596_v17 = vpop.f32.mrf.mxu1 }
 0x33b   :  { %503 = vst [vmem:[%s764_s9] sm:$0xf] %v500_v16 }

</bundles_post_ra>
